<compile_context>
chip_gen: v7x
topology: tpu7x:2x2x1
jax: 0.10.0
libtpu: 0.0.40
codegen_flags: <defaults>
</compile_context>

<pallas_src>
import functools

import jax
import jax.numpy as jnp
import numpy as np
from jax.experimental import pallas as pl
from jax.experimental.pallas import tpu as pltpu

# config (synthetic, small)
HIDDEN = 32   # config.hidden_dim
FILTER = 64   # config.filter
B = 2
S = 8


# ----------------------------- kernel ----------------------------------------
def _latent_kernel(train, hdim, fdim,
                   x_ref, xp_ref, eps_ref,
                   w1_ref, b12_ref, w2_ref, w3_ref, b3_ref,
                   z_ref, kld_ref):
  H, F = hdim, fdim
  x = x_ref[...]
  xp = xp_ref[...]
  eps = eps_ref[...]

  def relu(v):
    return jnp.maximum(v, 0.0)

  # ---- prior branch: fused (mean | log_var) FFN on x -------------------------
  # W1[:H]            : (H, 2F)   layer-1 weights of mean|var concatenated
  # W2[:2F], W3[:2F]  : block-diagonal fused layer-2 / layer-3 weights
  h = relu(jnp.dot(x, w1_ref[0:H, :], preferred_element_type=jnp.float32)
           + b12_ref[0:1, :])
  h = relu(jnp.dot(h, w2_ref[0:2 * F, :], preferred_element_type=jnp.float32)
           + b12_ref[1:2, :])
  out_q = relu(jnp.dot(h, w3_ref[0:2 * F, :], preferred_element_type=jnp.float32)
               + b3_ref[0:1, :])
  mean = out_q[:, :H]
  log_var = out_q[:, H:]

  # ---- posterior branch: fused (mean_p | log_var_p) FFN on concat(x_p, x) ----
  # concat folded into a row-split: xcat @ W1p == xp @ W1p[:H] + x @ W1p[H:]
  hp = relu(jnp.dot(xp, w1_ref[H:2 * H, :], preferred_element_type=jnp.float32)
            + jnp.dot(x, w1_ref[2 * H:3 * H, :],
                      preferred_element_type=jnp.float32)
            + b12_ref[2:3, :])
  hp = relu(jnp.dot(hp, w2_ref[2 * F:4 * F, :],
                    preferred_element_type=jnp.float32)
            + b12_ref[3:4, :])
  out_p = relu(jnp.dot(hp, w3_ref[2 * F:4 * F, :],
                       preferred_element_type=jnp.float32)
               + b3_ref[1:2, :])
  mean_p = out_p[:, :H]
  log_var_p = out_p[:, H:]

  # ---- reparameterization ----------------------------------------------------
  if train:                                           # static Python switch
    z_ref[...] = eps * jnp.exp(0.5 * log_var_p) + mean_p
  else:
    z_ref[...] = eps * jnp.exp(0.5 * log_var) + mean

  # ---- gaussian_kld per token (mean over tokens finalized in the wrapper) ----
  d = log_var_p - log_var
  inv_var = jnp.exp(-log_var)
  kld_ref[...] = -0.5 * jnp.sum(
      1.0 + d - jnp.square(mean - mean_p) * inv_var - jnp.exp(d),
      axis=-1, keepdims=True)


# ----------------------------- parameter packing -----------------------------
def _block_diag(a, b):
  ra, ca = a.shape
  rb, cb = b.shape
  top = jnp.concatenate([a, jnp.zeros((ra, cb), a.dtype)], axis=1)
  bot = jnp.concatenate([jnp.zeros((rb, ca), b.dtype), b], axis=1)
  return jnp.concatenate([top, bot], axis=0)


def _pack_params(params, H):
  Wm1, bm1, Wm2, bm2, Wm3, bm3 = params["mean"]
  Wv1, bv1, Wv2, bv2, Wv3, bv3 = params["var"]
  Wp1, bp1, Wp2, bp2, Wp3, bp3 = params["mean_p"]
  Wq1, bq1, Wq2, bq2, Wq3, bq3 = params["var_p"]

  # fused layer-1 weights: prior (H, 2F); posterior (2H, 2F) split into two
  # (H, 2F) row-blocks (x_p rows, then x rows).
  w1_q = jnp.concatenate([Wm1, Wv1], axis=1)            # (H, 2F)
  w1_p = jnp.concatenate([Wp1, Wq1], axis=1)            # (2H, 2F)
  W1 = jnp.concatenate([w1_q, w1_p[:H], w1_p[H:]], axis=0)   # (3H, 2F)

  # fused layer-2 / layer-3 weights (block-diagonal), prior then posterior.
  W2 = jnp.concatenate([_block_diag(Wm2, Wv2),
                        _block_diag(Wp2, Wq2)], axis=0)       # (4F, 2F)
  W3 = jnp.concatenate([_block_diag(Wm3, Wv3),
                        _block_diag(Wp3, Wq3)], axis=0)       # (4F, 2H)

  B12 = jnp.concatenate([
      jnp.concatenate([bm1, bv1], axis=1),   # prior layer-1
      jnp.concatenate([bm2, bv2], axis=1),   # prior layer-2
      jnp.concatenate([bp1, bq1], axis=1),   # posterior layer-1
      jnp.concatenate([bp2, bq2], axis=1),   # posterior layer-2
  ], axis=0)                                                  # (4, 2F)
  B3 = jnp.concatenate([
      jnp.concatenate([bm3, bv3], axis=1),   # prior layer-3
      jnp.concatenate([bp3, bq3], axis=1),   # posterior layer-3
  ], axis=0)                                                  # (2, 2H)
  return W1, B12, W2, W3, B3


# ----------------------------- wrapper ----------------------------------------
def latent_forward(x, x_p, eps, params, *, train=True, tn=None):
  """Pallas forward of Latent.  x, x_p, eps: (B, S, H) float32."""
  Bb, Ss, H = x.shape
  F = params["mean"][0].shape[1]
  N = Bb * Ss
  if tn is None:
    tn = N                      # single grid step at the test size
  assert N % tn == 0
  nblk = N // tn

  xf = x.reshape(N, H)
  xpf = x_p.reshape(N, H)
  epsf = eps.reshape(N, H)

  W1, B12, W2, W3, B3 = _pack_params(params, H)

  def tok_spec():
    return pl.BlockSpec((tn, H), lambda i: (i, 0))

  def full_spec(shape):
    return pl.BlockSpec(shape, lambda i: (0, 0))

  kernel = functools.partial(_latent_kernel, train, H, F)

  z_flat, kld_tok = pl.pallas_call(
      kernel,
      grid=(nblk,),
      in_specs=[tok_spec(), tok_spec(), tok_spec(),
                full_spec(W1.shape), full_spec(B12.shape),
                full_spec(W2.shape), full_spec(W3.shape),
                full_spec(B3.shape)],
      out_specs=(pl.BlockSpec((tn, H), lambda i: (i, 0)),
                 pl.BlockSpec((tn, 1), lambda i: (i, 0))),
      out_shape=(jax.ShapeDtypeStruct((N, H), jnp.float32),
                 jax.ShapeDtypeStruct((N, 1), jnp.float32)),
      compiler_params=pltpu.CompilerParams(
          dimension_semantics=("parallel",)),   # no cross-step state
  )(xf, xpf, epsf, W1, B12, W2, W3, B3)

  kld = jnp.mean(kld_tok)       # torch.mean over all tokens
  return kld, z_flat.reshape(Bb, Ss, H)


# ---------------- parameter init (deterministic, PyTorch-Linear-style) -------
def init_ffn(key, din, dfilt, dout):
  ks = jax.random.split(key, 6)

  def lin(kw, kb, fan_in, fan_out):
    bound = 1.0 / np.sqrt(fan_in)
    W = jax.random.uniform(kw, (fan_in, fan_out), jnp.float32, -bound, bound)
    b = jax.random.uniform(kb, (1, fan_out), jnp.float32, -bound, bound)
    return W, b

  W1, b1 = lin(ks[0], ks[1], din, dfilt)
  W2, b2 = lin(ks[2], ks[3], dfilt, dfilt)
  W3, b3 = lin(ks[4], ks[5], dfilt, dout)
  return (W1, b1, W2, b2, W3, b3)


# ---------------- pure-JAX reference for verification ------------------------
def _ffn_ref(x, p):
  W1, b1, W2, b2, W3, b3 = p
  h = jnp.maximum(x @ W1 + b1, 0.0)
  h = jnp.maximum(h @ W2 + b2, 0.0)
  h = jnp.maximum(h @ W3 + b3, 0.0)
  return h


def latent_ref(x, x_p, eps, params, train=True):
  mean = _ffn_ref(x, params["mean"])
  log_var = _ffn_ref(x, params["var"])
  xcat = jnp.concatenate([x_p, x], axis=-1)
  mean_p = _ffn_ref(xcat, params["mean_p"])
  log_var_p = _ffn_ref(xcat, params["var_p"])
  kld = -0.5 * jnp.sum(
      1.0 + (log_var_p - log_var)
      - jnp.square(mean - mean_p) / jnp.exp(log_var)
      - jnp.exp(log_var_p) / jnp.exp(log_var),
      axis=-1)
  kld = jnp.mean(kld)
  if train:
    z = eps * jnp.exp(0.5 * log_var_p) + mean_p
  else:
    z = eps * jnp.exp(0.5 * log_var) + mean
  return kld, z


if __name__ == "__main__":
  key = jax.random.PRNGKey(0)
  kx, kxp, keps, km, kv, kmp, kvp = jax.random.split(key, 7)

  x = jax.random.normal(kx, (B, S, HIDDEN), jnp.float32)
  x_p = jax.random.normal(kxp, (B, S, HIDDEN), jnp.float32)
  eps = jax.random.normal(keps, (B, S, HIDDEN), jnp.float32)  # torch.randn(x.size())

  params = {
      "mean": init_ffn(km, HIDDEN, FILTER, HIDDEN),
      "var": init_ffn(kv, HIDDEN, FILTER, HIDDEN),
      "mean_p": init_ffn(kmp, 2 * HIDDEN, FILTER, HIDDEN),
      "var_p": init_ffn(kvp, 2 * HIDDEN, FILTER, HIDDEN),
  }

  kld, z = latent_forward(x, x_p, eps, params, train=True)
  jax.block_until_ready((kld, z))

  kld_r, z_r = latent_ref(x, x_p, eps, params, train=True)
  assert np.allclose(np.asarray(z), np.asarray(z_r), rtol=1e-2, atol=1e-2), "z mismatch"
  assert np.allclose(float(kld), float(kld_r), rtol=1e-2, atol=1e-2), "kld mismatch"

  print("KERNEL_OK")
</pallas_src>

<mosaic_0001>
module attributes {stable_mosaic.version = 11 : i64} {
  func.func @_latent_kernel(%arg0: i32, %arg1: memref<16x32xf32, #tpu.memory_space<vmem>>, %arg2: memref<16x32xf32, #tpu.memory_space<vmem>>, %arg3: memref<16x32xf32, #tpu.memory_space<vmem>>, %arg4: memref<96x128xf32, #tpu.memory_space<vmem>>, %arg5: memref<4x128xf32, #tpu.memory_space<vmem>>, %arg6: memref<256x128xf32, #tpu.memory_space<vmem>>, %arg7: memref<256x64xf32, #tpu.memory_space<vmem>>, %arg8: memref<2x64xf32, #tpu.memory_space<vmem>>, %arg9: memref<16x32xf32, #tpu.memory_space<vmem>>, %arg10: memref<16x1xf32, #tpu.memory_space<vmem>>) attributes {dimension_semantics = [#tpu.dimension_semantics<parallel>], iteration_bounds = array<i64: 1>, scalar_prefetch = 0 : i64, scratch_operands = 0 : i64, tpu.core_type = #tpu.core_type<tc>, window_params = [{transform_indices = @transform_0, window_bounds = array<i64: 16, 32>}, {transform_indices = @transform_1, window_bounds = array<i64: 16, 32>}, {transform_indices = @transform_2, window_bounds = array<i64: 16, 32>}, {pipeline_mode = #tpu.pipeline_mode<synchronous>, transform_indices = @transform_3, window_bounds = array<i64: 96, 128>}, {pipeline_mode = #tpu.pipeline_mode<synchronous>, transform_indices = @transform_4, window_bounds = array<i64: 4, 128>}, {pipeline_mode = #tpu.pipeline_mode<synchronous>, transform_indices = @transform_5, window_bounds = array<i64: 256, 128>}, {pipeline_mode = #tpu.pipeline_mode<synchronous>, transform_indices = @transform_6, window_bounds = array<i64: 256, 64>}, {pipeline_mode = #tpu.pipeline_mode<synchronous>, transform_indices = @transform_7, window_bounds = array<i64: 2, 64>}, {transform_indices = @transform_8, window_bounds = array<i64: 16, 32>}, {transform_indices = @transform_9, window_bounds = array<i64: 16, 1>}]} {
    %c0 = arith.constant 0 : index
    %c0_0 = arith.constant 0 : index
    %0 = vector.load %arg1[%c0, %c0_0] : memref<16x32xf32, #tpu.memory_space<vmem>>, vector<16x32xf32>
    %c0_1 = arith.constant 0 : index
    %c0_2 = arith.constant 0 : index
    %1 = vector.load %arg2[%c0_1, %c0_2] : memref<16x32xf32, #tpu.memory_space<vmem>>, vector<16x32xf32>
    %c0_3 = arith.constant 0 : index
    %c0_4 = arith.constant 0 : index
    %2 = vector.load %arg3[%c0_3, %c0_4] : memref<16x32xf32, #tpu.memory_space<vmem>>, vector<16x32xf32>
    %c0_5 = arith.constant 0 : index
    %c0_6 = arith.constant 0 : index
    %3 = vector.load %arg4[%c0_5, %c0_6] : memref<96x128xf32, #tpu.memory_space<vmem>>, vector<32x128xf32>
    %cst = arith.constant dense<0.000000e+00> : vector<16x128xf32>
    %4 = tpu.matmul %0, %3, %cst {dimension_numbers = #tpu.dot_dimension_numbers<[1], [0], [0], [1], [0, 0, 1, 1], [], []>} : vector<16x32xf32>, vector<32x128xf32>, vector<16x128xf32> -> vector<16x128xf32>
    %c0_7 = arith.constant 0 : index
    %c0_8 = arith.constant 0 : index
    %5 = vector.load %arg5[%c0_7, %c0_8] : memref<4x128xf32, #tpu.memory_space<vmem>>, vector<1x128xf32>
    %6 = vector.broadcast %5 : vector<1x128xf32> to vector<16x128xf32>
    %7 = arith.addf %4, %6 : vector<16x128xf32>
    %cst_9 = arith.constant 0.000000e+00 : f32
    %8 = vector.broadcast %cst_9 : f32 to vector<16x128xf32>
    %9 = arith.maximumf %7, %8 : vector<16x128xf32>
    %c0_10 = arith.constant 0 : index
    %c0_11 = arith.constant 0 : index
    %10 = vector.load %arg6[%c0_10, %c0_11] : memref<256x128xf32, #tpu.memory_space<vmem>>, vector<128x128xf32>
    %cst_12 = arith.constant dense<0.000000e+00> : vector<16x128xf32>
    %11 = tpu.matmul %9, %10, %cst_12 {dimension_numbers = #tpu.dot_dimension_numbers<[1], [0], [0], [1], [0, 0, 1, 1], [], []>} : vector<16x128xf32>, vector<128x128xf32>, vector<16x128xf32> -> vector<16x128xf32>
    %c1 = arith.constant 1 : index
    %c0_13 = arith.constant 0 : index
    %12 = vector.load %arg5[%c1, %c0_13] : memref<4x128xf32, #tpu.memory_space<vmem>>, vector<1x128xf32>
    %13 = vector.broadcast %12 : vector<1x128xf32> to vector<16x128xf32>
    %14 = arith.addf %11, %13 : vector<16x128xf32>
    %cst_14 = arith.constant 0.000000e+00 : f32
    %15 = vector.broadcast %cst_14 : f32 to vector<16x128xf32>
    %16 = arith.maximumf %14, %15 : vector<16x128xf32>
    %c0_15 = arith.constant 0 : index
    %c0_16 = arith.constant 0 : index
    %17 = vector.load %arg7[%c0_15, %c0_16] : memref<256x64xf32, #tpu.memory_space<vmem>>, vector<128x64xf32>
    %cst_17 = arith.constant dense<0.000000e+00> : vector<16x64xf32>
    %18 = tpu.matmul %16, %17, %cst_17 {dimension_numbers = #tpu.dot_dimension_numbers<[1], [0], [0], [1], [0, 0, 1, 1], [], []>} : vector<16x128xf32>, vector<128x64xf32>, vector<16x64xf32> -> vector<16x64xf32>
    %c0_18 = arith.constant 0 : index
    %c0_19 = arith.constant 0 : index
    %19 = vector.load %arg8[%c0_18, %c0_19] : memref<2x64xf32, #tpu.memory_space<vmem>>, vector<1x64xf32>
    %20 = vector.broadcast %19 : vector<1x64xf32> to vector<16x64xf32>
    %21 = arith.addf %18, %20 : vector<16x64xf32>
    %cst_20 = arith.constant 0.000000e+00 : f32
    %22 = vector.broadcast %cst_20 : f32 to vector<16x64xf32>
    %23 = arith.maximumf %21, %22 : vector<16x64xf32>
    %24 = vector.extract_strided_slice %23 {offsets = [0, 0], sizes = [16, 32], strides = [1, 1]} : vector<16x64xf32> to vector<16x32xf32>
    %25 = vector.extract_strided_slice %23 {offsets = [0, 32], sizes = [16, 32], strides = [1, 1]} : vector<16x64xf32> to vector<16x32xf32>
    %c32 = arith.constant 32 : index
    %c0_21 = arith.constant 0 : index
    %26 = vector.load %arg4[%c32, %c0_21] : memref<96x128xf32, #tpu.memory_space<vmem>>, vector<32x128xf32>
    %cst_22 = arith.constant dense<0.000000e+00> : vector<16x128xf32>
    %27 = tpu.matmul %1, %26, %cst_22 {dimension_numbers = #tpu.dot_dimension_numbers<[1], [0], [0], [1], [0, 0, 1, 1], [], []>} : vector<16x32xf32>, vector<32x128xf32>, vector<16x128xf32> -> vector<16x128xf32>
    %c64 = arith.constant 64 : index
    %c0_23 = arith.constant 0 : index
    %28 = vector.load %arg4[%c64, %c0_23] : memref<96x128xf32, #tpu.memory_space<vmem>>, vector<32x128xf32>
    %cst_24 = arith.constant dense<0.000000e+00> : vector<16x128xf32>
    %29 = tpu.matmul %0, %28, %cst_24 {dimension_numbers = #tpu.dot_dimension_numbers<[1], [0], [0], [1], [0, 0, 1, 1], [], []>} : vector<16x32xf32>, vector<32x128xf32>, vector<16x128xf32> -> vector<16x128xf32>
    %30 = arith.addf %27, %29 : vector<16x128xf32>
    %c2 = arith.constant 2 : index
    %c0_25 = arith.constant 0 : index
    %31 = vector.load %arg5[%c2, %c0_25] : memref<4x128xf32, #tpu.memory_space<vmem>>, vector<1x128xf32>
    %32 = vector.broadcast %31 : vector<1x128xf32> to vector<16x128xf32>
    %33 = arith.addf %30, %32 : vector<16x128xf32>
    %cst_26 = arith.constant 0.000000e+00 : f32
    %34 = vector.broadcast %cst_26 : f32 to vector<16x128xf32>
    %35 = arith.maximumf %33, %34 : vector<16x128xf32>
    %c128 = arith.constant 128 : index
    %c0_27 = arith.constant 0 : index
    %36 = vector.load %arg6[%c128, %c0_27] : memref<256x128xf32, #tpu.memory_space<vmem>>, vector<128x128xf32>
    %cst_28 = arith.constant dense<0.000000e+00> : vector<16x128xf32>
    %37 = tpu.matmul %35, %36, %cst_28 {dimension_numbers = #tpu.dot_dimension_numbers<[1], [0], [0], [1], [0, 0, 1, 1], [], []>} : vector<16x128xf32>, vector<128x128xf32>, vector<16x128xf32> -> vector<16x128xf32>
    %c3 = arith.constant 3 : index
    %c0_29 = arith.constant 0 : index
    %38 = vector.load %arg5[%c3, %c0_29] : memref<4x128xf32, #tpu.memory_space<vmem>>, vector<1x128xf32>
    %39 = vector.broadcast %38 : vector<1x128xf32> to vector<16x128xf32>
    %40 = arith.addf %37, %39 : vector<16x128xf32>
    %cst_30 = arith.constant 0.000000e+00 : f32
    %41 = vector.broadcast %cst_30 : f32 to vector<16x128xf32>
    %42 = arith.maximumf %40, %41 : vector<16x128xf32>
    %c128_31 = arith.constant 128 : index
    %c0_32 = arith.constant 0 : index
    %43 = vector.load %arg7[%c128_31, %c0_32] : memref<256x64xf32, #tpu.memory_space<vmem>>, vector<128x64xf32>
    %cst_33 = arith.constant dense<0.000000e+00> : vector<16x64xf32>
    %44 = tpu.matmul %42, %43, %cst_33 {dimension_numbers = #tpu.dot_dimension_numbers<[1], [0], [0], [1], [0, 0, 1, 1], [], []>} : vector<16x128xf32>, vector<128x64xf32>, vector<16x64xf32> -> vector<16x64xf32>
    %c1_34 = arith.constant 1 : index
    %c0_35 = arith.constant 0 : index
    %45 = vector.load %arg8[%c1_34, %c0_35] : memref<2x64xf32, #tpu.memory_space<vmem>>, vector<1x64xf32>
    %46 = vector.broadcast %45 : vector<1x64xf32> to vector<16x64xf32>
    %47 = arith.addf %44, %46 : vector<16x64xf32>
    %cst_36 = arith.constant 0.000000e+00 : f32
    %48 = vector.broadcast %cst_36 : f32 to vector<16x64xf32>
    %49 = arith.maximumf %47, %48 : vector<16x64xf32>
    %50 = vector.extract_strided_slice %49 {offsets = [0, 0], sizes = [16, 32], strides = [1, 1]} : vector<16x64xf32> to vector<16x32xf32>
    %51 = vector.extract_strided_slice %49 {offsets = [0, 32], sizes = [16, 32], strides = [1, 1]} : vector<16x64xf32> to vector<16x32xf32>
    %cst_37 = arith.constant 5.000000e-01 : f32
    %52 = vector.broadcast %cst_37 : f32 to vector<16x32xf32>
    %53 = arith.mulf %52, %51 : vector<16x32xf32>
    %54 = math.exp %53 : vector<16x32xf32>
    %55 = arith.mulf %2, %54 : vector<16x32xf32>
    %56 = arith.addf %55, %50 : vector<16x32xf32>
    %c0_38 = arith.constant 0 : index
    %c0_39 = arith.constant 0 : index
    %57 = vector.load %arg9[%c0_38, %c0_39] : memref<16x32xf32, #tpu.memory_space<vmem>>, vector<16x32xf32>
    tpu.vector_store %arg9[%c0_38, %c0_39], %56 {strides = array<i32>} : memref<16x32xf32, #tpu.memory_space<vmem>>, vector<16x32xf32>,
    %58 = arith.subf %51, %25 : vector<16x32xf32>
    %cst_40 = arith.constant 0.000000e+00 : f32
    %59 = vector.broadcast %cst_40 : f32 to vector<16x32xf32>
    %60 = arith.subf %59, %25 : vector<16x32xf32>
    %61 = math.exp %60 : vector<16x32xf32>
    %cst_41 = arith.constant 1.000000e+00 : f32
    %62 = vector.broadcast %cst_41 : f32 to vector<16x32xf32>
    %63 = arith.addf %62, %58 : vector<16x32xf32>
    %64 = arith.subf %24, %50 : vector<16x32xf32>
    %65 = arith.mulf %64, %64 : vector<16x32xf32>
    %66 = arith.mulf %65, %61 : vector<16x32xf32>
    %67 = arith.subf %63, %66 : vector<16x32xf32>
    %68 = math.exp %58 : vector<16x32xf32>
    %69 = arith.subf %67, %68 : vector<16x32xf32>
    %cst_42 = arith.constant dense<0.000000e+00> : vector<16xf32>
    %70 = vector.multi_reduction <add>, %69, %cst_42 [1] : vector<16x32xf32> to vector<16xf32>
    %71 = vector.shape_cast %70 : vector<16xf32> to vector<16x1xf32>
    %cst_43 = arith.constant -5.000000e-01 : f32
    %72 = vector.broadcast %cst_43 : f32 to vector<16x1xf32>
    %73 = arith.mulf %72, %71 : vector<16x1xf32>
    %c0_44 = arith.constant 0 : index
    %c0_45 = arith.constant 0 : index
    %74 = vector.load %arg10[%c0_44, %c0_45] : memref<16x1xf32, #tpu.memory_space<vmem>>, vector<16x1xf32>
    tpu.vector_store %arg10[%c0_44, %c0_45], %73 {strides = array<i32>} : memref<16x1xf32, #tpu.memory_space<vmem>>, vector<16x1xf32>,
    return
  }
  func.func @transform_0(%arg0: i32) -> (i32, i32) {
    %c0_i32 = arith.constant 0 : i32
    %c0_i32_0 = arith.constant 0 : i32
    return %arg0, %c0_i32 : i32, i32
  }
  func.func @transform_1(%arg0: i32) -> (i32, i32) {
    %c0_i32 = arith.constant 0 : i32
    %c0_i32_0 = arith.constant 0 : i32
    return %arg0, %c0_i32 : i32, i32
  }
  func.func @transform_2(%arg0: i32) -> (i32, i32) {
    %c0_i32 = arith.constant 0 : i32
    %c0_i32_0 = arith.constant 0 : i32
    return %arg0, %c0_i32 : i32, i32
  }
  func.func @transform_3(%arg0: i32) -> (i32, i32) {
    %c0_i32 = arith.constant 0 : i32
    %c0_i32_0 = arith.constant 0 : i32
    %c0_i32_1 = arith.constant 0 : i32
    return %c0_i32, %c0_i32_0 : i32, i32
  }
  func.func @transform_4(%arg0: i32) -> (i32, i32) {
    %c0_i32 = arith.constant 0 : i32
    %c0_i32_0 = arith.constant 0 : i32
    %c0_i32_1 = arith.constant 0 : i32
    return %c0_i32, %c0_i32_0 : i32, i32
  }
  func.func @transform_5(%arg0: i32) -> (i32, i32) {
    %c0_i32 = arith.constant 0 : i32
    %c0_i32_0 = arith.constant 0 : i32
    %c0_i32_1 = arith.constant 0 : i32
    return %c0_i32, %c0_i32_0 : i32, i32
  }
  func.func @transform_6(%arg0: i32) -> (i32, i32) {
    %c0_i32 = arith.constant 0 : i32
    %c0_i32_0 = arith.constant 0 : i32
    %c0_i32_1 = arith.constant 0 : i32
    return %c0_i32, %c0_i32_0 : i32, i32
  }
  func.func @transform_7(%arg0: i32) -> (i32, i32) {
    %c0_i32 = arith.constant 0 : i32
    %c0_i32_0 = arith.constant 0 : i32
    %c0_i32_1 = arith.constant 0 : i32
    return %c0_i32, %c0_i32_0 : i32, i32
  }
  func.func @transform_8(%arg0: i32) -> (i32, i32) {
    %c0_i32 = arith.constant 0 : i32
    %c0_i32_0 = arith.constant 0 : i32
    return %arg0, %c0_i32 : i32, i32
  }
  func.func @transform_9(%arg0: i32) -> (i32, i32) {
    %c0_i32 = arith.constant 0 : i32
    %c0_i32_0 = arith.constant 0 : i32
    return %arg0, %c0_i32 : i32, i32
  }
}

</mosaic_0001>

<bundles_post_ra>
// kernel: tpu_custom_call.1
= control target key start
LH: loop header
LB: loop body
LE: loop exit
PB: predicated region body
PF: predicated region fallthrough
CT: control target
= control target key end

     0   :  { %15 = vsyncpa [#allocation3], 0  ;;  %s1671_s0 = inlined_call_operand.vmem [shape: f32[16,32], index: 0, kind: input, shape index: {}]   ;;  %s1672_s1 = inlined_call_operand.vmem [shape: f32[16,32], index: 1, kind: input, shape index: {}]   ;;  %s1673_s2 = inlined_call_operand.vmem [shape: f32[16,32], index: 2, kind: input, shape index: {}]   ;;  %s1674_s3 = inlined_call_operand.vmem [shape: f32[96,128], index: 3, kind: input, shape index: {}]   ;;  %s1675_s4 = inlined_call_operand.hbm [shape: f32[4,128], index: 4, kind: input, shape index: {}]   ;;  %s1676_s5 = inlined_call_operand.vmem [shape: f32[256,128], index: 5, kind: input, shape index: {}]   ;;  %s1677_s6 = inlined_call_operand.vmem [shape: f32[256,64], index: 6, kind: input, shape index: {}]   ;;  %s1678_s7 = inlined_call_operand.vmem [shape: f32[2,64], index: 7, kind: input, shape index: {}]   ;;  %s1679_s8 = inlined_call_operand.hbm [shape: f32[16,32], index: 8, kind: output, shape index: {0}]   ;;  %s1680_s9 = inlined_call_operand.vmem [shape: f32[16,1], index: 9, kind: output, shape index: {1}]  }
   0x1   :  { %16 = vsyncpa [#allocation4], 0  ;;  %s1303_s30 = smov [#allocation2]   ;;  %s1255_s13 = scalar_lea.hbm %s1675_s4, 64 }
   0x2   :  { %s31_s10 = sshll.u32 %s1303_s30, 4  ;;  %p1256_p0 = scmp.ne.s32.totalorder %s1675_s4, %s1255_s13  ;;  %s32_s10 = int_to_ptr.vmem [resolvable:$true] %s31_s10 }
   0x3   :  { %p1259_p1 = scmp.lt.u32.totalorder %s1255_s13, %s1675_s4 }
   0x5   :  { %p1261_p2 = pnand %p1259_p1, %p1256_p0 }
   0x7   :  { %1264 = shalt.err (!%p1261_p2)
}
   0x8   :  { %s1265_s18 = scalar_lea.vmem %s32_s10, 64  ;;  %p1270_p4 = scmp.lt.s32.totalorder %s32_s10, %s32_s10 }
   0x9   :  { %p1266_p3 = scmp.ne.s32.totalorder %s32_s10, %s1265_s18  ;;  %p1271_p5 = scmp.lt.s32.totalorder %s1265_s18, %s1265_s18 }
   0xb   :  { %p1272_p6 = por %p1271_p5, %p1270_p4 }
   0xd   :  { %p1273_p7 = pnand %p1272_p6, %p1266_p3 }
   0xf   :  { %1276 = shalt.err (!%p1273_p7)
}
  0x10   :  { %34 = dma.hbm_to_vmem [thread:$0]  %s1675_s4, 64, %s32_s10, [#allocation3]  }
  0x11   :  { %1299 = dma.done.wait [#allocation3], 64  }
  0x12   :  { %1300 = vsyncadd [#allocation3], 4294967232  ;;  %vm59_vm0 = vcmask 261120   ;;  %v50_v0 = vld [vmem:[%s1674_s3] sm:$0xff]  ;;  %v51_v1 = vld [vmem:[%s1674_s3 + $0x8] sm:$0xff]  ;;  %s1305_s17 = smov 32  }
  0x13   :  { %v52_v2 = vld [vmem:[%s1674_s3 + $0x10] sm:$0xff]  ;;  %v1083_v3 = vpack.c.bf16 %v51_v1, %v50_v0  ;;  %v53_v4 = vld [vmem:[%s1674_s3 + $0x18] sm:$0xff]  ;;  %v1386_v5 = vld [vmem:[%s1671_s0] sm:$0xff]  ;;  %vm784_vm1 = vcmask 7168   ;;  %s1306_s24 = smov [#allocation5]  }
  0x14   :  { %v1087_v6 = vpack.c.bf16 %v53_v4, %v52_v2  ;;  %918 = vmatprep.mubr.msk.f32.mxu0 %vm59_vm0, %v1386_v5  ;;  %v143_v7 = vld [vmem:[%s1676_s5] sm:$0xff]  ;;  %v144_v8 = vld [vmem:[%s1676_s5 + $0x8] sm:$0xff]  ;;  %v145_v9 = vld [vmem:[%s1676_s5 + $0x10] sm:$0xff]  ;;  %s792_s25 = sshll.u32 %s1306_s24, 4  ;;  %s793_s25 = int_to_ptr.vmem [resolvable:$true] %s792_s25 }
  0x15   :  { %1084 = vmatprep.subr.bf16.mxu0 %v1083_v3  ;;  %v1091_v10 = vpack.c.bf16 %v144_v8, %v143_v7  ;;  %v146_v11 = vld [vmem:[%s1676_s5 + $0x18] sm:$0xff]  ;;  %v147_v13 = vld [vmem:[%s1676_s5 + $0x20] sm:$0xff]  ;;  %v148_v14 = vld [vmem:[%s1676_s5 + $0x28] sm:$0xff]  ;;  %s1277_s26 = scalar_lea.vmem %s793_s25, 256  ;;  %p1282_p9 = scmp.lt.s32.totalorder %s793_s25, %s793_s25 }
  0x16   :  { %1086 = vmatpush3.bf16.msra.mxu0 %v1083_v3  ;;  %v1095_v12 = vpack.c.bf16 %v146_v11, %v145_v9  ;;  %v1099_v15 = vpack.c.bf16 %v148_v14, %v147_v13  ;;  %v1411_v16 = vld [vmem:[%s1671_s0 + $0x8] sm:$0xff]  ;;  %v149_v17 = vld [vmem:[%s1676_s5 + $0x30] sm:$0xff]  ;;  %v150_v18 = vld [vmem:[%s1676_s5 + $0x38] sm:$0xff]  ;;  %p1278_p8 = scmp.ne.s32.totalorder %s793_s25, %s1277_s26  ;;  %p1283_p10 = scmp.lt.s32.totalorder %s1277_s26, %s1277_s26 }
  0x17   :  { %1088 = vmatprep.subr.bf16.mxu0 %v1087_v6  ;;  %1092 = vmatprep.subr.bf16.mxu1 %v1091_v10  ;;  %v1103_v19 = vpack.c.bf16 %v150_v18, %v149_v17  ;;  %v151_v20 = vld [vmem:[%s1676_s5 + $0x40] sm:$0xff]  ;;  %v152_v21 = vld [vmem:[%s1676_s5 + $0x48] sm:$0xff]  ;;  %v153_v23 = vld [vmem:[%s1676_s5 + $0x50] sm:$0xff] }
  0x18   :  { %1094 = vmatpush3.bf16.msra.mxu1 %v1091_v10  ;;  %v1107_v22 = vpack.c.bf16 %v152_v21, %v151_v20  ;;  %v154_v24 = vld [vmem:[%s1676_s5 + $0x58] sm:$0xff]  ;;  %v155_v26 = vld [vmem:[%s1676_s5 + $0x60] sm:$0xff]  ;;  %v156_v27 = vld [vmem:[%s1676_s5 + $0x68] sm:$0xff]  ;;  %p1284_p11 = por %p1283_p10, %p1282_p9 }
  0x19   :  { %1096 = vmatprep.subr.bf16.mxu1 %v1095_v12  ;;  %v1111_v25 = vpack.c.bf16 %v154_v24, %v153_v23  ;;  %v1115_v28 = vpack.c.bf16 %v156_v27, %v155_v26  ;;  %v157_v29 = vld [vmem:[%s1676_s5 + $0x70] sm:$0xff]  ;;  %v158_v30 = vld [vmem:[%s1676_s5 + $0x78] sm:$0xff]  ;;  %v343_v32 = vld [vmem:[%s1674_s3 + $0x40] sm:$0xff] }
  0x1a   :  { %1090 = vmatpush3.bf16.msra.mxu0 %v1087_v6  ;;  %v1119_v31 = vpack.c.bf16 %v158_v30, %v157_v29  ;;  %v344_v33 = vld [vmem:[%s1674_s3 + $0x48] sm:$0xff]  ;;  %v241_v35 = vld [vmem:[%s1677_s6] sm:$0xff]  ;;  %v243_v37 = vld [vmem:[%s1677_s6 + $0x10] sm:$0xff]  ;;  %p1285_p12 = pnand %p1284_p11, %p1278_p8 }
  0x1b   :  { %v1155_v34 = vpack.c.bf16 %v344_v33, %v343_v32  ;;  %v242_v36 = vld [vmem:[%s1677_s6 + $0x8] sm:$0xff]  ;;  %v244_v39 = vld [vmem:[%s1677_s6 + $0x18] sm:$0xff]  ;;  %v245_v41 = vld [vmem:[%s1677_s6 + $0x20] sm:$0xff] }
  0x1c   :  { %1098 = vmatpush3.bf16.msra.mxu1 %v1095_v12  ;;  %v1123_v38 = vpack.c.bf16 %v242_v36, %v241_v35  ;;  %v1127_v40 = vpack.c.bf16 %v244_v39, %v243_v37  ;;  %v246_v42 = vld [vmem:[%s1677_s6 + $0x28] sm:$0xff]  ;;  %v247_v44 = vld [vmem:[%s1677_s6 + $0x30] sm:$0xff]  ;;  %v248_v45 = vld [vmem:[%s1677_s6 + $0x38] sm:$0xff] }
  0x1d   :  { %919 = vmatmul.mubr.msk.f32.vlgmr.msra.gmra.mrb[0].mxu0 %vm59_vm0, %v1411_v16  ;;  %1100 = vmatprep.subr.bf16.mxu1 %v1099_v15  ;;  %v1131_v43 = vpack.c.bf16 %v246_v42, %v245_v41  ;;  %v1135_v46 = vpack.c.bf16 %v248_v45, %v247_v44  ;;  %v249_v47 = vld [vmem:[%s1677_s6 + $0x40] sm:$0xff]  ;;  %v250_v48 = vld [vmem:[%s1677_s6 + $0x48] sm:$0xff]  ;;  %v251_v50 = vld [vmem:[%s1677_s6 + $0x50] sm:$0xff] }
  0x1e   :  { %1124 = vmatprep.subr.bf16.mxu0 %v1123_v38  ;;  %v1139_v49 = vpack.c.bf16 %v250_v48, %v249_v47  ;;  %v252_v51 = vld [vmem:[%s1677_s6 + $0x58] sm:$0xff]  ;;  %v253_v53 = vld [vmem:[%s1677_s6 + $0x60] sm:$0xff]  ;;  %v254_v54 = vld [vmem:[%s1677_s6 + $0x68] sm:$0xff] }
  0x1f   :  { %1126 = vmatpush3.bf16.msra.mxu0 %v1123_v38  ;;  %v1143_v52 = vpack.c.bf16 %v252_v51, %v251_v50  ;;  %v1147_v55 = vpack.c.bf16 %v254_v54, %v253_v53  ;;  %v808_v56 = vld [vmem:[#allocation2] ss:$0 sm:$0xff]  ;;  %v345_v61 = vld [vmem:[%s1674_s3 + $0x50] sm:$0xff]  ;;  %v346_v62 = vld [vmem:[%s1674_s3 + $0x58] sm:$0xff] }
  0x20   :  { %1102 = vmatpush3.bf16.msra.mxu1 %v1099_v15  ;;  %1128 = vmatprep.subr.bf16.mxu0 %v1127_v40  ;;  %v1159_v1 = vpack.c.bf16 %v346_v62, %v345_v61  ;;  %v339_v2 = vld [vmem:[%s1674_s3 + $0x20] sm:$0xff]  ;;  %v340_v3 = vld [vmem:[%s1674_s3 + $0x28] sm:$0xff]  ;;  %v341_v6 = vld [vmem:[%s1674_s3 + $0x30] sm:$0xff] }
  0x21   :  { %1104 = vmatprep.subr.bf16.mxu1 %v1103_v19  ;;  %v1163_v4 = vpack.c.bf16 %v340_v3, %v339_v2  ;;  %v342_v7 = vld [vmem:[%s1674_s3 + $0x38] sm:$0xff]  ;;  %v46_v9 = vld [vmem:[%s1672_s1] sm:$0xff]  ;;  %v255_v10 = vld [vmem:[%s1677_s6 + $0x70] sm:$0xff] }
  0x22   :  { %v1167_v8 = vpack.c.bf16 %v342_v7, %v341_v6  ;;  %v256_v11 = vld [vmem:[%s1677_s6 + $0x78] sm:$0xff]  ;;  %v512_v13 = vld [vmem:[%s1676_s5 + $0x80] sm:$0xff]  ;;  %v513_v14 = vld [vmem:[%s1676_s5 + $0x88] sm:$0xff] }
  0x23   :  { %1130 = vmatpush3.bf16.msra.mxu0 %v1127_v40  ;;  %v1151_v12 = vpack.c.bf16 %v256_v11, %v255_v10  ;;  %v1171_v15 = vpack.c.bf16 %v513_v14, %v512_v13  ;;  %v514_v21 = vld [vmem:[%s1676_s5 + $0x90] sm:$0xff]  ;;  %v516_v26 = vld [vmem:[%s1676_s5 + $0xa0] sm:$0xff]  ;;  %v517_v27 = vld [vmem:[%s1676_s5 + $0xa8] sm:$0xff] }
  0x24   :  { %1106 = vmatpush3.bf16.msra.mxu1 %v1103_v19  ;;  %1132 = vmatprep.subr.bf16.mxu0 %v1131_v43  ;;  %v518_v29 = vld [vmem:[%s1676_s5 + $0xb0] sm:$0xff]  ;;  %v519_v30 = vld [vmem:[%s1676_s5 + $0xb8] sm:$0xff]  ;;  %v520_v32 = vld [vmem:[%s1676_s5 + $0xc0] sm:$0xff] }
  0x25   :  { %1108 = vmatprep.subr.bf16.mxu1 %v1107_v22  ;;  %v521_v33 = vld [vmem:[%s1676_s5 + $0xc8] sm:$0xff]  ;;  %v522_v39 = vld [vmem:[%s1676_s5 + $0xd0] sm:$0xff]  ;;  %v523_v40 = vld [vmem:[%s1676_s5 + $0xd8] sm:$0xff] }
  0x26   :  { %v1187_v36 = vpack.c.bf16 %v521_v33, %v520_v32  ;;  %v1191_v42 = vpack.c.bf16 %v523_v40, %v522_v39  ;;  %v525_v44 = vld [vmem:[%s1676_s5 + $0xe8] sm:$0xff]  ;;  %v527_v47 = vld [vmem:[%s1676_s5 + $0xf8] sm:$0xff]  ;;  %v610_v51 = vld [vmem:[%s1677_s6 + $0x80] sm:$0xff] }
  0x27   :  { %1134 = vmatpush3.bf16.msra.mxu0 %v1131_v43  ;;  %v524_v43 = vld [vmem:[%s1676_s5 + $0xe0] sm:$0xff]  ;;  %v612_v54 = vld [vmem:[%s1677_s6 + $0x90] sm:$0xff]  ;;  %v617_v61 = vld [vmem:[%s1677_s6 + $0xb8] sm:$0xff] }
  0x28   :  { %1110 = vmatpush3.bf16.msra.mxu1 %v1107_v22  ;;  %1136 = vmatprep.subr.bf16.mxu0 %v1135_v46  ;;  %v515_v22 = vld [vmem:[%s1676_s5 + $0x98] sm:$0xff]  ;;  %v1195_v45 = vpack.c.bf16 %v525_v44, %v524_v43  ;;  %v620_v2 = vld [vmem:[%s1677_s6 + $0xd0] sm:$0xff]  ;;  %v622_v6 = vld [vmem:[%s1677_s6 + $0xe0] sm:$0xff] }
  0x29   :  { %1112 = vmatprep.subr.bf16.mxu1 %v1111_v25  ;;  %v621_v3 = vld [vmem:[%s1677_s6 + $0xd8] sm:$0xff]  ;;  %v623_v7 = vld [vmem:[%s1677_s6 + $0xe8] sm:$0xff]  ;;  %v812_v11 = vld [vmem:[%s1678_s7] ss:$0 sm:$0xff] }
  0x2b   :  { %1138 = vmatpush3.bf16.msra.mxu0 %v1135_v46  ;;  %v526_v46 = vld [vmem:[%s1676_s5 + $0xf0] sm:$0xff] }
  0x2c   :  { %1114 = vmatpush3.bf16.msra.mxu1 %v1111_v25  ;;  %1140 = vmatprep.subr.bf16.mxu0 %v1139_v49  ;;  %v1175_v25 = vpack.c.bf16 %v515_v22, %v514_v21  ;;  %v1199_v48 = vpack.c.bf16 %v527_v47, %v526_v46 }
  0x2d   :  { %1116 = vmatprep.subr.bf16.mxu1 %v1115_v28 }
  0x2f   :  { %1142 = vmatpush3.bf16.msra.mxu0 %v1139_v49 }
  0x30   :  { %1118 = vmatpush3.bf16.msra.mxu1 %v1115_v28  ;;  %1144 = vmatprep.subr.bf16.mxu0 %v1143_v52  ;;  %v1179_v28 = vpack.c.bf16 %v517_v27, %v516_v26 }
  0x31   :  { %1120 = vmatprep.subr.bf16.mxu1 %v1119_v31 }
  0x33   :  { %1146 = vmatpush3.bf16.msra.mxu0 %v1143_v52  ;;  %v611_v52 = vld [vmem:[%s1677_s6 + $0x88] sm:$0xff] }
  0x34   :  { %1122 = vmatpush3.bf16.msra.mxu1 %v1119_v31  ;;  %1148 = vmatprep.subr.bf16.mxu0 %v1147_v55  ;;  %v1183_v31 = vpack.c.bf16 %v519_v30, %v518_v29  ;;  %v1203_v53 = vpack.c.bf16 %v611_v52, %v610_v51 }
  0x35   :  { %1156 = vmatprep.subr.bf16.mxu1 %v1155_v34 }
  0x37   :  { %1150 = vmatpush3.bf16.msra.mxu0 %v1147_v55  ;;  %v613_v55 = vld [vmem:[%s1677_s6 + $0x98] sm:$0xff] }
  0x38   :  { %1152 = vmatprep.subr.bf16.mxu0 %v1151_v12 }
  0x3b   :  { %1154 = vmatpush3.bf16.msra.mxu0 %v1151_v12 }
  0x3c   :  { %1172 = vmatprep.subr.bf16.mxu0 %v1171_v15 }
  0xf0   :  { %v920_v57 = vpop.f32.mrb[0].mxu0 }
  0xf1   :  { %v138_v58 = vadd.f32 %v920_v57, %v808_v56  ;;  %v132_v59 = vpop.f32.mrb[1].mxu0  ;;  %v614_v57 = vld [vmem:[%s1677_s6 + $0xa0] sm:$0xff] }
  0xf2   :  { %v133_v60 = vadd.f32 %v808_v56, %v132_v59  ;;  %v1207_v56 = vpack.c.bf16 %v613_v55, %v612_v54  ;;  %v616_v59 = vld [vmem:[%s1677_s6 + $0xb0] sm:$0xff] }
  0xf3   :  { %v142_v0 = vmax.f32 %v138_v58, 0.0  ;;  %v615_v58 = vld [vmem:[%s1677_s6 + $0xa8] sm:$0xff]  ;;  %v1215_v62 = vpack.c.bf16 %v617_v61, %v616_v59 }
  0xf4   :  { %v141_v63 = vmax.f32 %v133_v60, 0.0  ;;  %v1211_v60 = vpack.c.bf16 %v615_v58, %v614_v57 }
  0xf6   :  { %953 = vmatprep.mubr.f32.mxu1 %v141_v63  ;;  %v618_v63 = vld [vmem:[%s1677_s6 + $0xc0] sm:$0xff] }
  0xf7   :  { %954 = vmatmul.mubr.f32.vlgmr.msra.gmra.mrb[0].mxu1 %v142_v0  ;;  %v619_v0 = vld [vmem:[%s1677_s6 + $0xc8] sm:$0xff] }
  0xf8   :  { %1158 = vmatpush3.bf16.msra.mxu1 %v1155_v34  ;;  %999 = vmatprep.mubr.msk.f32.mxu1 %vm59_vm0, %v1386_v5  ;;  %v47_v5 = vld [vmem:[%s1672_s1 + $0x8] sm:$0xff]  ;;  %v817_v34 = vld [vmem:[#allocation2 + $0x2] ss:$0 sm:$0xff] }
  0xf9   :  { %1160 = vmatprep.subr.bf16.mxu1 %v1159_v1 }
  0xfc   :  { %1162 = vmatpush3.bf16.msra.mxu1 %v1159_v1  ;;  %v1219_v1 = vpack.c.bf16 %v619_v0, %v618_v63 }
  0xfd   :  { %1164 = vmatprep.subr.bf16.mxu1 %v1163_v4 }
  0xff   :  { %1000 = vmatmul.mubr.msk.f32.vlgmr.msra.gmra.mrb[2].mxu1 %vm59_vm0, %v1411_v16  ;;  %v811_v16 = vld [vmem:[#allocation2 + $0x1] ss:$0 sm:$0xff] }
 0x100   :  { %1166 = vmatpush3.bf16.msra.mxu1 %v1163_v4  ;;  %1010 = vmatprep.mubr.msk.f32.mxu1 %vm59_vm0, %v46_v9  ;;  %v1223_v4 = vpack.c.bf16 %v621_v3, %v620_v2  ;;  %v624_v9 = vld [vmem:[%s1677_s6 + $0xf0] sm:$0xff] }
 0x101   :  { %1168 = vmatprep.subr.bf16.mxu1 %v1167_v8 }
 0x104   :  { %1170 = vmatpush3.bf16.msra.mxu1 %v1167_v8  ;;  %v1227_v8 = vpack.c.bf16 %v623_v7, %v622_v6 }
 0x105   :  { %1204 = vmatprep.subr.bf16.mxu1 %v1203_v53 }
 0x107   :  { %1011 = vmatmul.mubr.msk.f32.vlgmr.msra.gmra.mrb[2].mxu1 %vm59_vm0, %v47_v5  ;;  %v625_v5 = vld [vmem:[%s1677_s6 + $0xf8] sm:$0xff]  ;;  %s1304_s6 = smov 96  }
 0x108   :  { %1206 = vmatpush3.bf16.msra.mxu1 %v1203_v53  ;;  %v1231_v10 = vpack.c.bf16 %v625_v5, %v624_v9  ;;  %v48_v9 = vld [vmem:[%s1673_s2] sm:$0xff] }
 0x109   :  { %1208 = vmatprep.subr.bf16.mxu1 %v1207_v56 }
 0x10c   :  { %1210 = vmatpush3.bf16.msra.mxu1 %v1207_v56 }
 0x10d   :  { %1212 = vmatprep.subr.bf16.mxu1 %v1211_v60 }
 0x110   :  { %1214 = vmatpush3.bf16.msra.mxu1 %v1211_v60 }
 0x111   :  { %1216 = vmatprep.subr.bf16.mxu1 %v1215_v62 }
 0x114   :  { %1218 = vmatpush3.bf16.msra.mxu1 %v1215_v62 }
 0x115   :  { %1220 = vmatprep.subr.bf16.mxu1 %v1219_v1 }
 0x118   :  { %1222 = vmatpush3.bf16.msra.mxu1 %v1219_v1 }
 0x119   :  { %1224 = vmatprep.subr.bf16.mxu1 %v1223_v4 }
 0x11c   :  { %1226 = vmatpush3.bf16.msra.mxu1 %v1223_v4 }
 0x11d   :  { %1228 = vmatprep.subr.bf16.mxu1 %v1227_v8 }
 0x120   :  { %1230 = vmatpush3.bf16.msra.mxu1 %v1227_v8 }
 0x121   :  { %1232 = vmatprep.subr.bf16.mxu1 %v1231_v10 }
 0x124   :  { %1234 = vmatpush3.bf16.msra.mxu1 %v1231_v10 }
 0x1ca   :  { %v955_v17 = vpop.f32.mrb[0].mxu1 }
 0x1cb   :  { %v236_v18 = vadd.f32 %v955_v17, %v811_v16  ;;  %v230_v19 = vpop.f32.mrb[1].mxu1 }
 0x1cc   :  { %v231_v20 = vadd.f32 %v811_v16, %v230_v19 }
 0x1cd   :  { %v240_v24 = vmax.f32 %v236_v18, 0.0 }
 0x1ce   :  { %v239_v23 = vmax.f32 %v231_v20, 0.0 }
 0x1d0   :  { %988 = vmatprep.mubr.f32.mxu0 %v239_v23 }
 0x1d1   :  { %989 = vmatmul.mubr.f32.vlgmr.msra.gmra.mrb[2].mxu0 %v240_v24  ;;  %v818_v24 = vld [vmem:[#allocation2 + $0x3] ss:$0 sm:$0xff] }
 0x1d2   :  { %1174 = vmatpush3.bf16.msra.mxu0 %v1171_v15 }
 0x1d3   :  { %1176 = vmatprep.subr.bf16.mxu0 %v1175_v25 }
 0x1d6   :  { %1178 = vmatpush3.bf16.msra.mxu0 %v1175_v25 }
 0x1d7   :  { %1180 = vmatprep.subr.bf16.mxu0 %v1179_v28 }
 0x1da   :  { %1182 = vmatpush3.bf16.msra.mxu0 %v1179_v28  ;;  %v1012_v35 = vpop.f32.mrb[2].mxu1 }
 0x1db   :  { %1184 = vmatprep.subr.bf16.mxu0 %v1183_v31  ;;  %v494_v37 = vpop.f32.mrb[3].mxu1  ;;  %v509_v49 = vadd.f32 %v1012_v35, %v817_v34 }
 0x1dc   :  { %v508_v38 = vadd.f32 %v817_v34, %v494_v37 }
 0x1dd   :  { %v511_v50 = vmax.f32 %v509_v49, 0.0 }
 0x1de   :  { %1186 = vmatpush3.bf16.msra.mxu0 %v1183_v31  ;;  %v510_v41 = vmax.f32 %v508_v38, 0.0  ;;  %v819_v31 = vld [vmem:[%s1678_s7 + $0x1] ss:$0 sm:$0xff] }
 0x1df   :  { %1188 = vmatprep.subr.bf16.mxu0 %v1187_v36 }
 0x1e0   :  { %1045 = vmatprep.mubr.f32.mxu0 %v510_v41 }
 0x1e2   :  { %1190 = vmatpush3.bf16.msra.mxu0 %v1187_v36 }
 0x1e3   :  { %1192 = vmatprep.subr.bf16.mxu0 %v1191_v42 }
 0x1e6   :  { %1194 = vmatpush3.bf16.msra.mxu0 %v1191_v42 }
 0x1e7   :  { %1196 = vmatprep.subr.bf16.mxu0 %v1195_v45 }
 0x1ea   :  { %1198 = vmatpush3.bf16.msra.mxu0 %v1195_v45 }
 0x1eb   :  { %1200 = vmatprep.subr.bf16.mxu0 %v1199_v48 }
 0x1ee   :  { %1202 = vmatpush3.bf16.msra.mxu0 %v1199_v48 }
 0x1f1   :  { %1046 = vmatmul.mubr.f32.vlgmr.msra.gmra.mrb[4].mxu0 %v511_v50 }
 0x2a4   :  { %v990_v12 = vpop.f32.mrb[2].mxu0 }
 0x2a5   :  { %v334_v13 = vadd.f32 %v990_v12, %v812_v11  ;;  %v328_v14 = vpop.f32.mrb[3].mxu0 }
 0x2a6   :  { %v329_v15 = vadd.f32 %v812_v11, %v328_v14 }
 0x2a7   :  { %v338_v16 = vmax.f32 %v334_v13, 0.0  ;;  %v49_v13 = vld [vmem:[%s1673_s2 + $0x8] sm:$0xff] }
 0x2a8   :  { %v337_v17 = vmax.f32 %v329_v15, 0.0 }
 0x2a9   :  { %v731_v18 = vsub.f32 0.0, %v338_v16 }
 0x2aa   :  { %v730_v19 = vsub.f32 0.0, %v337_v17 }
 0x2ab   :  { %v734_v21 = vmul.f32 1.442695, %v731_v18 }
 0x2ac   :  { %v732_v20 = vmul.f32 1.442695, %v730_v19 }
 0x2ae   :  { %1243 = vpow2.f32 %v732_v20 }
 0x2af   :  { %1245 = vpow2.f32 %v734_v21 }
 0x2b8   :  { %v1244_v22 = vpop.eup %1243 }
 0x2b9   :  { %744 = vrot.lane.b32.xlu0 %v1244_v22, %s1304_s6  ;;  %v1246_v23 = vpop.eup %1245 }
 0x2bd   :  { %746 = vrot.lane.b32.xlu0 %v1246_v23, %s1304_s6 }
 0x2c4   :  { %v1047_v25 = vpop.f32.mrb[4].mxu0 }
 0x2c5   :  { %v605_v26 = vadd.f32 %v1047_v25, %v818_v24  ;;  %v599_v27 = vpop.f32.mrb[5].mxu0 }
 0x2c6   :  { %v600_v28 = vadd.f32 %v818_v24, %v599_v27 }
 0x2c7   :  { %v609_v30 = vmax.f32 %v605_v26, 0.0 }
 0x2c8   :  { %v608_v29 = vmax.f32 %v600_v28, 0.0 }
 0x2ca   :  { %1080 = vmatprep.mubr.f32.mxu1 %v608_v29 }
 0x2cb   :  { %1081 = vmatmul.mubr.f32.vlgmr.msra.gmra.mrb[4].mxu1 %v609_v30 }
 0x32b   :  { %v745_v40 = vpop.permute.xlu0 %744 }
 0x32f   :  { %v747_v44 = vpop.permute.xlu0 %746 }
 0x39e   :  { %v1082_v32 = vpop.f32.mrb[4].mxu1 }
 0x39f   :  { %v703_v33 = vadd.f32 %v1082_v32, %v819_v31  ;;  %v697_v34 = vpop.f32.mrb[5].mxu1 }
 0x3a0   :  { %v698_v35 = vadd.f32 %v819_v31, %v697_v34 }
 0x3a1   :  { %v1633_v36 = vmax.f32 %v703_v33, 0.0 }
 0x3a2   :  { %v706_v37 = vmax.f32 %v698_v35, 0.0 }
 0x3a3   :  { %v739_v39 = vsub.f32 %v338_v16, %v1633_v36  ;;  %v729_v48 = vsub.f32 %v1633_v36, %v338_v16  ;;  %v709_v62 = vmul.f32 0.5, %v1633_v36 }
 0x3a4   :  { %v738_v38 = vsub.f32 %v337_v17, %v706_v37  ;;  %v728_v46 = vsub.f32 %v706_v37, %v337_v17  ;;  %v708_v0 = vmul.f32 0.5, %v706_v37 }
 0x3a5   :  { %v741_v43 = vmul.f32 %v739_v39, %v739_v39  ;;  %v764_v49 = vmul.f32 1.442695, %v729_v48  ;;  %v737_v55 = vadd.f32 1.0, %v729_v48  ;;  %v712_v2 = vmul.f32 1.442695, %v709_v62 }
 0x3a6   :  { %v740_v41 = vmul.f32 %v738_v38, %v738_v38  ;;  %v762_v47 = vmul.f32 1.442695, %v728_v46  ;;  %v736_v50 = vadd.f32 1.0, %v728_v46  ;;  %v710_v3 = vmul.f32 1.442695, %v708_v0 }
 0x3a7   :  { %v751_v45 = vmul.f32 %v747_v44, %v741_v43 }
 0x3a8   :  { %v750_v42 = vmul.f32 %v745_v40, %v740_v41  ;;  %1247 = vpow2.f32 %v762_v47 }
 0x3a9   :  { %1249 = vpow2.f32 %v764_v49 }
 0x3aa   :  { %754 = vrot.lane.b32.xlu1 %v750_v42, %s1305_s17  ;;  %1251 = vpow2.f32 %v712_v2 }
 0x3ab   :  { %1253 = vpow2.f32 %v710_v3 }
 0x3ae   :  { %756 = vrot.lane.b32.xlu1 %v751_v45, %s1305_s17 }
 0x3b2   :  { %v1248_v53 = vpop.eup %1247 }
 0x3b3   :  { %v1250_v58 = vpop.eup %1249 }
 0x3b4   :  { %v1252_v4 = vpop.eup %1251 }
 0x3b5   :  { %v1254_v6 = vpop.eup %1253 }
 0x41c   :  { %v755_v51 = vpop.permute.xlu1 %754 }
 0x41d   :  { %v760_v52 = vsub.f32 %v736_v50, %v755_v51 }
 0x41f   :  { %v766_v54 = vsub.f32 %v760_v52, %v1248_v53 }
 0x420   :  { %v757_v56 = vpop.permute.xlu1 %756 }
 0x421   :  { %v761_v57 = vsub.f32 %v737_v55, %v757_v56  ;;  %770 = vrot.lane.b32.xlu0 %v766_v54, %s1304_s6 }
 0x423   :  { %v767_v59 = vsub.f32 %v761_v57, %v1250_v58 }
 0x425   :  { %772 = vrot.lane.b32.xlu1 %v767_v59, %s1304_s6 }
 0x493   :  { %v771_v60 = vpop.permute.xlu0 %770 }
 0x494   :  { %v776_v61 = vsel %vm59_vm0, %v771_v60, 0.0 }
 0x495   :  { %777 = vadd.xlane.f32.xlu0 %v776_v61 }
 0x497   :  { %v773_v63 = vpop.permute.xlu1 %772 }
 0x498   :  { %v779_v1 = vsel %vm59_vm0, %v773_v63, 0.0 }
 0x499   :  { %780 = vadd.xlane.f32.xlu1 %v779_v1 }
 0x4aa   :  { %718 = vrot.lane.b32.xlu1 %v1252_v4, %s1304_s6 }
 0x4ab   :  { %716 = vrot.lane.b32.xlu0 %v1254_v6, %s1304_s6 }
 0x522   :  { %v778_v7 = vpop.xlane.xlu0 %777 }
 0x523   :  { %v782_v8 = vmul.f32 -0.5, %v778_v7 }
 0x525   :  { %785 = vst.msk [vmem:[%s1680_s9] sm:$0xff] %vm784_vm1, %v782_v8 }
 0x526   :  { %v781_v5 = vpop.xlane.xlu1 %780  ;;  %v717_v10 = vpop.permute.xlu0 %716 }
 0x527   :  { %v783_v11 = vmul.f32 -0.5, %v781_v5  ;;  %v722_v12 = vmul.f32 %v717_v10, %v48_v9 }
 0x529   :  { %786 = vst.msk [vmem:[%s1680_s9 + $0x8] sm:$0xff] %vm784_vm1, %v783_v11  ;;  %v724_v14 = vadd.f32 %v722_v12, %v706_v37 }
 0x52a   :  { %v719_v15 = vpop.permute.xlu1 %718 }
 0x52b   :  { %726 = vst.msk [vmem:[#allocation5] sm:$0xff] %vm59_vm0, %v724_v14  ;;  %v723_v16 = vmul.f32 %v719_v15, %v49_v13 }
 0x52d   :  { %v725_v17 = vadd.f32 %v723_v16, %v1633_v36 }
 0x52f   :  { %727 = vst.msk [vmem:[#allocation5 + $0x8] sm:$0xff] %vm59_vm0, %v725_v17 }
 0x530   :  { %1288 = shalt.err (!%p1285_p12)
}
 0x531   :  { %s1289_s27 = scalar_lea.hbm %s1679_s8, 256 }
 0x532   :  { %p1290_p13 = scmp.ne.s32.totalorder %s1679_s8, %s1289_s27  ;;  %p1293_p0 = scmp.lt.u32.totalorder %s1289_s27, %s1679_s8 }
 0x534   :  { %p1295_p1 = pnand %p1293_p0, %p1290_p13 }
 0x536   :  { %1298 = shalt.err (!%p1295_p1)
}
 0x537   :  { %s1307_s29 = smov 128   ;;  %s1308_s30 = smov 8  }
 0x538   :  { %798 = dma.vmem_to_hbm [thread:$0]  %s793_s25, 256, %s1679_s8, [#allocation4], %s1307_s29, %s1307_s29, %s1308_s30  }
 0x539   :  { %1301 = dma.done.wait [#allocation4], 256  }
 0x53a   :  { %1302 = vsyncadd [#allocation4], 4294967040 }
 0x53b   :  { %806 = vsyncpa [#allocation3], 1 }
 0x53c   :  { %807 = vsyncpa [#allocation4], 1 }

</bundles_post_ra>
